<compile_context>
chip_gen: v7x
topology: tpu7x:2x2x1
jax: 0.10.0
libtpu: 0.0.40
codegen_flags: <defaults>
</compile_context>

<pallas_src>
import functools
import math
import re

import jax
import jax.numpy as jnp
from jax.experimental import pallas as pl
from jax.experimental.pallas import tpu as pltpu


# ----------------------------------------------------------------------------
# Kernel
# ----------------------------------------------------------------------------
def _low_filter_kernel(x_ref, wf_ref, wi_ref, fa_ref, fb_ref, wd_ref, mred_ref,
                       b_ref, g_ref, beta_ref, o_ref, *, eps, fp, s):
    """One (S, TB*H) batch tile: rfft -> filter -> irfft -> dense -> +x -> LN."""
    x = x_ref[...].astype(jnp.float32)                        # (S, TBH), f32
    mm = wf_ref.dtype                                         # bf16 (default) / f32

    # Fused ortho rfft along seq: ONE (2Fp, S) @ (S, TBH) matmul -> [Re; Im].
    xf = jnp.dot(wf_ref[...], x.astype(mm),
                 preferred_element_type=jnp.float32)          # (2Fp, TBH)

    # Complex filter as whole-vreg VPU math + one XLU roll (no slice/concat):
    #   xf = [xr; xi],  roll(xf, Fp, axis=0) = [xi; xr]
    #   y  = xf*[fr; fr] + roll(xf)*[-fi; fi] = [xr*fr - xi*fi ; xi*fr + xr*fi]
    y = xf * fa_ref[...] + pltpu.roll(xf, fp, axis=0) * fb_ref[...]

    # Fused ortho irfft: ONE (S, 2Fp) @ (2Fp, TBH) matmul.
    seq = jnp.dot(wi_ref[...], y.astype(mm),
                  preferred_element_type=jnp.float32)         # (S, TBH)

    # Dense via batch-block-diagonal kron(I_TB, W^T), + bias + residual.
    hid = jnp.dot(seq.astype(mm), wd_ref[...],
                  preferred_element_type=jnp.float32)         # (S, TBH)
    # TODO(synk): training-mode dropout not implemented (inference identity).
    z = hid + b_ref[...] + x                                  # f32

    # LayerNorm over hidden within each H-lane group: ONE fused stats matmul
    # (stacked [z; z*z]) against kron(I_TB, ones(H,H)/H) gives mean and E[z^2]
    # together, already broadcast back across the H lanes of each group.
    zz = jnp.concatenate([z, z * z], axis=0)                  # (2S, TBH)
    stats = jnp.dot(zz.astype(mm), mred_ref[...],
                    preferred_element_type=jnp.float32)       # (2S, TBH)
    u = stats[:s]                                             # group mean
    var = jnp.maximum(stats[s:] - u * u, 0.0)                 # guard cancellation
    normed = (z - u) * jax.lax.rsqrt(var + eps)               # f32 normalization
    o_ref[...] = (g_ref[...] * normed + beta_ref[...]).astype(o_ref.dtype)


# ----------------------------------------------------------------------------
# Device / tiling helpers
# ----------------------------------------------------------------------------
@functools.lru_cache(maxsize=1)
def _tpu_generation():
    try:
        kind = jax.devices()[0].device_kind.lower()
    except Exception:
        return None
    m = re.search(r"(\d+)", kind)
    return int(m.group(1)) if m else None


@functools.lru_cache(maxsize=1)
def _vmem_capacity_bytes():
    try:
        cap = int(getattr(pltpu.get_tpu_info(), "vmem_capacity_bytes", 0))
        if cap > 0:
            return cap
    except Exception:
        pass
    gen = _tpu_generation()
    # 64 MiB per TensorCore on v7x; 128 MiB on v5e/v6e (and as safe default).
    return (64 if (gen is not None and gen >= 7) else 128) * 1024 * 1024


@functools.lru_cache(maxsize=1)
def _buffered_one_supported():
    """Probe ONCE whether pipeline_mode=pl.Buffered(1) lowers & compiles."""
    try:
        spec = pl.BlockSpec((8, 128), lambda i: (0, 0),
                            pipeline_mode=pl.Buffered(1))

        def _copy(x_ref, o_ref):
            o_ref[...] = x_ref[...]

        fn = pl.pallas_call(
            _copy,
            out_shape=jax.ShapeDtypeStruct((8, 128), jnp.float32),
            grid=(1,),
            in_specs=[spec],
            out_specs=pl.BlockSpec((8, 128), lambda i: (0, 0)))
        jax.jit(fn).lower(jax.ShapeDtypeStruct((8, 128), jnp.float32)).compile()
        return True
    except Exception:
        # Narrow scope: only this tiny probe is guarded, never the real call.
        return False


def _choose_tiling(B, H, lane_target, min_tiles):
    """Batch tile TB, padded batch Bp and grid length, with TB*H % 128 == 0."""
    g = 128 // math.gcd(H, 128)              # smallest TB with (TB*H) % 128 == 0
    kmax = max(1, lane_target // (g * H))

    def score(k):
        tb = g * k
        nt = max(1, -(-B // tb))
        pad = nt * tb - B
        # Prefer: enough tiles for all TensorCores, then minimal batch padding,
        # then the widest (most lane-dense / fewest grid steps) tile.
        return (0 if nt >= min_tiles else 1, pad, -k)

    k = min(range(1, kmax + 1), key=score)
    tb = g * k
    nt = max(1, -(-B // tb))
    return tb, nt * tb, nt


# ----------------------------------------------------------------------------
# Constants (DFT matrices, filter stacks, block-diagonal dense / LN matrices)
# ----------------------------------------------------------------------------
def _build_constants(S, H, TB, complex_weight, dense_w, dense_b,
                     ln_gamma, ln_beta, mm_dtype):
    F = S // 2 + 1
    Fp = ((F + 7) // 8) * 8                   # pad freq bins to sublane multiple

    t = jnp.arange(S, dtype=jnp.float32)
    k = jnp.arange(F, dtype=jnp.float32)
    theta = 2.0 * math.pi * k[:, None] * t[None, :] / S       # (F, S)
    inv_sqrt_n = 1.0 / math.sqrt(S)
    fcos = jnp.cos(theta) * inv_sqrt_n                         # (F, S)  Re weights
    fsin = -jnp.sin(theta) * inv_sqrt_n                        # (F, S)  Im weights

    # Hermitian-symmetry weights: DC (and Nyquist for even S) count once.
    c = jnp.full((F,), 2.0, jnp.float32).at[0].set(1.0)
    if S % 2 == 0:
        c = c.at[F - 1].set(1.0)
    icos = (jnp.cos(theta).T * c[None, :]) * inv_sqrt_n        # (S, F)
    isin = (-jnp.sin(theta).T * c[None, :]) * inv_sqrt_n       # (S, F)

    # Fused, zero-padded forward / inverse real-DFT matrices.
    wf = jnp.zeros((2 * Fp, S), jnp.float32)
    wf = wf.at[:F].set(fcos).at[Fp:Fp + F].set(fsin)           # (2Fp, S)
    wi = jnp.zeros((S, 2 * Fp), jnp.float32)
    wi = wi.at[:, :F].set(icos).at[:, Fp:Fp + F].set(isin)     # (S, 2Fp)

    # Filter weights: zero-pad in freq, tile across the folded batch, then
    # stack / sign-flip for the roll-based complex multiply (f32 / VPU path).
    wr = jnp.zeros((Fp, H), jnp.float32).at[:F].set(complex_weight[0, :, :, 0])
    wim = jnp.zeros((Fp, H), jnp.float32).at[:F].set(complex_weight[0, :, :, 1])
    fr_t = jnp.tile(wr, (1, TB))                               # (Fp, TB*H)
    fi_t = jnp.tile(wim, (1, TB))
    fa = jnp.concatenate([fr_t, fr_t], axis=0)                 # (2Fp, TB*H)
    fb = jnp.concatenate([-fi_t, fi_t], axis=0)                # (2Fp, TB*H)

    # Batch-block-diagonal dense weight and LayerNorm reduction matrix.
    eye = jnp.eye(TB, dtype=jnp.float32)
    wd = jnp.kron(eye, dense_w.T.astype(jnp.float32))          # (TB*H, TB*H)
    mred = jnp.kron(eye, jnp.full((H, H), 1.0 / H, jnp.float32))

    b_t = jnp.tile(dense_b.reshape(1, H).astype(jnp.float32), (1, TB))
    g_t = jnp.tile(ln_gamma.reshape(1, H).astype(jnp.float32), (1, TB))
    be_t = jnp.tile(ln_beta.reshape(1, H).astype(jnp.float32), (1, TB))

    consts = (wf.astype(mm_dtype), wi.astype(mm_dtype), fa, fb,
              wd.astype(mm_dtype), mred.astype(mm_dtype), b_t, g_t, be_t)
    return Fp, consts


# ----------------------------------------------------------------------------
# Forward
# ----------------------------------------------------------------------------
@functools.partial(jax.jit, static_argnames=("eps", "use_bf16_matmul",
                                              "lane_target", "min_tiles",
                                              "single_buffer_consts"))
def _low_filter_forward(x, complex_weight, dense_w, dense_b, ln_gamma, ln_beta,
                        *, eps, use_bf16_matmul, lane_target, min_tiles,
                        single_buffer_consts):
    B, S, H = x.shape
    F = S // 2 + 1
    assert complex_weight.shape == (1, F, H, 2)

    TB, Bp, n_tiles = _choose_tiling(B, H, lane_target, min_tiles)
    TBH = TB * H
    mm_dtype = jnp.bfloat16 if use_bf16_matmul else jnp.float32

    Fp, consts = _build_constants(S, H, TB, complex_weight, dense_w, dense_b,
                                  ln_gamma, ln_beta, mm_dtype)

    # Fold batch into MXU lanes: (B, S, H) -> (S, Bp*H), zero-padding WHOLE
    # batch elements so every block is a 128-lane multiple (lane-dense stores).
    # TODO(synk): when stacking FMLP blocks, keep activations in this folded
    # layout across layers to avoid repeating the fold/unfold HBM passes.
    x32 = x.astype(jnp.float32)
    if Bp > B:
        x32 = jnp.pad(x32, ((0, Bp - B), (0, 0), (0, 0)))
    x_l = jnp.transpose(x32, (1, 0, 2)).reshape(S, Bp * H)

    # --- BlockSpecs ----------------------------------------------------------
    if single_buffer_consts:
        def const_spec(shape):
            return pl.BlockSpec(shape, lambda i: (0, 0),
                                pipeline_mode=pl.Buffered(1))
    else:
        def const_spec(shape):
            return pl.BlockSpec(shape, lambda i: (0, 0))

    in_specs = [pl.BlockSpec((S, TBH), lambda i: (0, i))]      # x slab per tile
    in_specs += [const_spec(c.shape) for c in consts]
    out_spec = pl.BlockSpec((S, TBH), lambda i: (0, i))        # lane-dense store

    # --- cost estimate & VMEM budget -----------------------------------------
    const_bytes = sum(int(c.size) * c.dtype.itemsize for c in consts)
    block_bytes = S * TBH * 4
    mxu_macs_per_tile = (2 * (2 * Fp) * S * TBH                # fused rfft + irfft
                         + 3 * S * TBH * TBH)                  # dense + fused LN stats
    cost = pl.CostEstimate(
        flops=int(2 * n_tiles * mxu_macs_per_tile),
        transcendentals=int(n_tiles * S * TBH),                # rsqrt
        bytes_accessed=int(2 * Bp * S * H * 4 + const_bytes))

    const_buf = 1 if single_buffer_consts else 2
    interm_bytes = (8 * Fp + 12 * S) * TBH * 4                 # live f32 temporaries
    vmem_needed = 2 * 2 * block_bytes + const_buf * const_bytes + interm_bytes
    vmem_cap = _vmem_capacity_bytes()
    vmem_limit = int(min(int(0.9 * vmem_cap),
                         max(vmem_needed * 3 // 2, 32 << 20)))

    kernel = functools.partial(_low_filter_kernel, eps=eps, fp=Fp, s=S)

    out_l = pl.pallas_call(
        kernel,
        out_shape=jax.ShapeDtypeStruct((S, Bp * H), jnp.float32),
        grid_spec=pltpu.PrefetchScalarGridSpec(
            num_scalar_prefetch=0,
            grid=(n_tiles,),
            in_specs=in_specs,
            out_specs=out_spec),
        compiler_params=pltpu.CompilerParams(
            dimension_semantics=("parallel",),
            vmem_limit_bytes=vmem_limit),
        cost_estimate=cost,
    )(x_l, *consts)

    # Unfold lanes back to (B, S, H) and drop batch padding.
    out = jnp.transpose(out_l.reshape(S, Bp, H), (1, 0, 2))
    return out[:B] if Bp > B else out


def low_filter_layer(x, complex_weight, dense_w, dense_b, ln_gamma, ln_beta,
                     eps=1e-12, use_bf16_matmul=True, lane_target=None):
    """LowFilterLayer forward (inference). x: (B, S, H) f32 -> (B, S, H) f32."""
    gen = _tpu_generation()
    if lane_target is None:
        # v6e/v7x: 256-wide MXU -> 256-lane tiles; v5e (128-wide MXU): 128.
        lane_target = 256 if (gen is not None and gen >= 6) else 128
    # v7x has 2 TensorCores per chip: prefer >= 2 grid steps when possible.
    min_tiles = 2 if (gen is not None and gen >= 7) else 1
    return _low_filter_forward(
        x, complex_weight, dense_w, dense_b, ln_gamma, ln_beta,
        eps=float(eps), use_bf16_matmul=bool(use_bf16_matmul),
        lane_target=int(lane_target), min_tiles=int(min_tiles),
        single_buffer_consts=_buffered_one_supported())


# ----------------------------------------------------------------------------
# Pure-JAX reference (mirrors the PyTorch forward, eval mode)
# ----------------------------------------------------------------------------
def _reference(x, complex_weight, dense_w, dense_b, ln_gamma, ln_beta, eps=1e-12):
    B, S, H = x.shape
    xf = jnp.fft.rfft(x, axis=1, norm="ortho")
    w = complex_weight[..., 0] + 1j * complex_weight[..., 1]   # (1, F, H)
    xf = xf * w
    seq_emb = jnp.fft.irfft(xf, n=S, axis=1, norm="ortho")
    h = seq_emb @ dense_w.T + dense_b
    z = h + x
    u = z.mean(-1, keepdims=True)
    s = ((z - u) ** 2).mean(-1, keepdims=True)
    return ln_gamma * ((z - u) / jnp.sqrt(s + eps)) + ln_beta


if __name__ == "__main__":
    B, S, H = 2, 8, 32          # batch=2, max_seq_len=8, hidden_size=32
    F = S // 2 + 1

    key = jax.random.PRNGKey(0)
    k_x, k_cw, k_w, k_b = jax.random.split(key, 4)

    x = jax.random.normal(k_x, (B, S, H), dtype=jnp.float32)
    complex_weight = jax.random.normal(k_cw, (1, F, H, 2), dtype=jnp.float32) * 0.02
    lim = 1.0 / math.sqrt(H)
    dense_w = jax.random.uniform(k_w, (H, H), minval=-lim, maxval=lim,
                                 dtype=jnp.float32)
    dense_b = jax.random.uniform(k_b, (H,), minval=-lim, maxval=lim,
                                 dtype=jnp.float32)
    ln_gamma = jnp.ones((H,), jnp.float32)
    ln_beta = jnp.zeros((H,), jnp.float32)

    ref = _reference(x, complex_weight, dense_w, dense_b, ln_gamma, ln_beta)

    # Default path: bf16 MXU operands, f32 filter / residual / LN math.
    out = low_filter_layer(x, complex_weight, dense_w, dense_b,
                           ln_gamma, ln_beta)
    out = jax.block_until_ready(out)
    assert out.shape == (B, S, H)
    err_bf16 = float(jnp.max(jnp.abs(out - ref)))
    assert err_bf16 < 3e-2, f"bf16 path mismatch vs reference: {err_bf16}"

    # Full-f32 MXU path of the same kernel (tighter accuracy check).
    out32 = low_filter_layer(x, complex_weight, dense_w, dense_b,
                             ln_gamma, ln_beta, use_bf16_matmul=False)
    out32 = jax.block_until_ready(out32)
    err_f32 = float(jnp.max(jnp.abs(out32 - ref)))
    assert err_f32 < 2e-3, f"f32 path mismatch vs reference: {err_f32}"

    print("KERNEL_OK")
</pallas_src>

<mosaic_0001>
module attributes {stable_mosaic.version = 11 : i64} {
  func.func @_low_filter_kernel(%arg0: i32, %arg1: memref<8x128xf32, #tpu.memory_space<vmem>>, %arg2: memref<16x8xbf16, #tpu.memory_space<vmem>>, %arg3: memref<8x16xbf16, #tpu.memory_space<vmem>>, %arg4: memref<16x128xf32, #tpu.memory_space<vmem>>, %arg5: memref<16x128xf32, #tpu.memory_space<vmem>>, %arg6: memref<128x128xbf16, #tpu.memory_space<vmem>>, %arg7: memref<128x128xbf16, #tpu.memory_space<vmem>>, %arg8: memref<1x128xf32, #tpu.memory_space<vmem>>, %arg9: memref<1x128xf32, #tpu.memory_space<vmem>>, %arg10: memref<1x128xf32, #tpu.memory_space<vmem>>, %arg11: memref<8x128xf32, #tpu.memory_space<vmem>>) attributes {dimension_semantics = [#tpu.dimension_semantics<parallel>], iteration_bounds = array<i64: 1>, scalar_prefetch = 0 : i64, scratch_operands = 0 : i64, tpu.core_type = #tpu.core_type<tc>, window_params = [{transform_indices = @transform_0, window_bounds = array<i64: 8, 128>}, {pipeline_mode = #tpu.pipeline_mode<synchronous>, transform_indices = @transform_1, window_bounds = array<i64: 16, 8>}, {pipeline_mode = #tpu.pipeline_mode<synchronous>, transform_indices = @transform_2, window_bounds = array<i64: 8, 16>}, {pipeline_mode = #tpu.pipeline_mode<synchronous>, transform_indices = @transform_3, window_bounds = array<i64: 16, 128>}, {pipeline_mode = #tpu.pipeline_mode<synchronous>, transform_indices = @transform_4, window_bounds = array<i64: 16, 128>}, {pipeline_mode = #tpu.pipeline_mode<synchronous>, transform_indices = @transform_5, window_bounds = array<i64: 128, 128>}, {pipeline_mode = #tpu.pipeline_mode<synchronous>, transform_indices = @transform_6, window_bounds = array<i64: 128, 128>}, {pipeline_mode = #tpu.pipeline_mode<synchronous>, transform_indices = @transform_7, window_bounds = array<i64: 1, 128>}, {pipeline_mode = #tpu.pipeline_mode<synchronous>, transform_indices = @transform_8, window_bounds = array<i64: 1, 128>}, {pipeline_mode = #tpu.pipeline_mode<synchronous>, transform_indices = @transform_9, window_bounds = array<i64: 1, 128>}, {transform_indices = @transform_10, window_bounds = array<i64: 8, 128>}]} {
    %c0 = arith.constant 0 : index
    %c0_0 = arith.constant 0 : index
    %0 = vector.load %arg1[%c0, %c0_0] : memref<8x128xf32, #tpu.memory_space<vmem>>, vector<8x128xf32>
    %c0_1 = arith.constant 0 : index
    %c0_2 = arith.constant 0 : index
    %1 = vector.load %arg2[%c0_1, %c0_2] : memref<16x8xbf16, #tpu.memory_space<vmem>>, vector<16x8xbf16>
    %2 = arith.truncf %0 : vector<8x128xf32> to vector<8x128xbf16>
    %cst = arith.constant dense<0.000000e+00> : vector<16x128xf32>
    %3 = tpu.matmul %1, %2, %cst {dimension_numbers = #tpu.dot_dimension_numbers<[1], [0], [0], [1], [0, 0, 1, 1], [], []>} : vector<16x8xbf16>, vector<8x128xbf16>, vector<16x128xf32> -> vector<16x128xf32>
    %c0_3 = arith.constant 0 : index
    %c0_4 = arith.constant 0 : index
    %4 = vector.load %arg4[%c0_3, %c0_4] : memref<16x128xf32, #tpu.memory_space<vmem>>, vector<16x128xf32>
    %5 = arith.mulf %3, %4 : vector<16x128xf32>
    %c8_i32 = arith.constant 8 : i32
    %6 = tpu.dynamic_rotate %3 by %c8_i32 dim 0 : vector<16x128xf32>, i32 -> vector<16x128xf32>
    %c0_5 = arith.constant 0 : index
    %c0_6 = arith.constant 0 : index
    %7 = vector.load %arg5[%c0_5, %c0_6] : memref<16x128xf32, #tpu.memory_space<vmem>>, vector<16x128xf32>
    %8 = arith.mulf %6, %7 : vector<16x128xf32>
    %9 = arith.addf %5, %8 : vector<16x128xf32>
    %c0_7 = arith.constant 0 : index
    %c0_8 = arith.constant 0 : index
    %10 = vector.load %arg3[%c0_7, %c0_8] : memref<8x16xbf16, #tpu.memory_space<vmem>>, vector<8x16xbf16>
    %11 = arith.truncf %9 : vector<16x128xf32> to vector<16x128xbf16>
    %cst_9 = arith.constant dense<0.000000e+00> : vector<8x128xf32>
    %12 = tpu.matmul %10, %11, %cst_9 {dimension_numbers = #tpu.dot_dimension_numbers<[1], [0], [0], [1], [0, 0, 1, 1], [], []>} : vector<8x16xbf16>, vector<16x128xbf16>, vector<8x128xf32> -> vector<8x128xf32>
    %13 = arith.truncf %12 : vector<8x128xf32> to vector<8x128xbf16>
    %c0_10 = arith.constant 0 : index
    %c0_11 = arith.constant 0 : index
    %14 = vector.load %arg6[%c0_10, %c0_11] : memref<128x128xbf16, #tpu.memory_space<vmem>>, vector<128x128xbf16>
    %cst_12 = arith.constant dense<0.000000e+00> : vector<8x128xf32>
    %15 = tpu.matmul %13, %14, %cst_12 {dimension_numbers = #tpu.dot_dimension_numbers<[1], [0], [0], [1], [0, 0, 1, 1], [], []>} : vector<8x128xbf16>, vector<128x128xbf16>, vector<8x128xf32> -> vector<8x128xf32>
    %c0_13 = arith.constant 0 : index
    %c0_14 = arith.constant 0 : index
    %16 = vector.load %arg8[%c0_13, %c0_14] : memref<1x128xf32, #tpu.memory_space<vmem>>, vector<1x128xf32>
    %17 = vector.broadcast %16 : vector<1x128xf32> to vector<8x128xf32>
    %18 = arith.addf %15, %17 : vector<8x128xf32>
    %19 = arith.addf %18, %0 : vector<8x128xf32>
    %20 = arith.mulf %19, %19 : vector<8x128xf32>
    %21 = tpu.concatenate %19, %20 in 0 : vector<8x128xf32>, vector<8x128xf32> -> vector<16x128xf32>
    %22 = arith.truncf %21 : vector<16x128xf32> to vector<16x128xbf16>
    %c0_15 = arith.constant 0 : index
    %c0_16 = arith.constant 0 : index
    %23 = vector.load %arg7[%c0_15, %c0_16] : memref<128x128xbf16, #tpu.memory_space<vmem>>, vector<128x128xbf16>
    %cst_17 = arith.constant dense<0.000000e+00> : vector<16x128xf32>
    %24 = tpu.matmul %22, %23, %cst_17 {dimension_numbers = #tpu.dot_dimension_numbers<[1], [0], [0], [1], [0, 0, 1, 1], [], []>} : vector<16x128xbf16>, vector<128x128xbf16>, vector<16x128xf32> -> vector<16x128xf32>
    %25 = vector.extract_strided_slice %24 {offsets = [0, 0], sizes = [8, 128], strides = [1, 1]} : vector<16x128xf32> to vector<8x128xf32>
    %26 = vector.extract_strided_slice %24 {offsets = [8, 0], sizes = [8, 128], strides = [1, 1]} : vector<16x128xf32> to vector<8x128xf32>
    %27 = arith.mulf %25, %25 : vector<8x128xf32>
    %28 = arith.subf %26, %27 : vector<8x128xf32>
    %cst_18 = arith.constant 0.000000e+00 : f32
    %29 = vector.broadcast %cst_18 : f32 to vector<8x128xf32>
    %30 = arith.maximumf %28, %29 : vector<8x128xf32>
    %31 = arith.subf %19, %25 : vector<8x128xf32>
    %cst_19 = arith.constant 9.99999996E-13 : f32
    %32 = vector.broadcast %cst_19 : f32 to vector<8x128xf32>
    %33 = arith.addf %30, %32 : vector<8x128xf32>
    %34 = math.rsqrt %33 : vector<8x128xf32>
    %35 = arith.mulf %31, %34 : vector<8x128xf32>
    %c0_20 = arith.constant 0 : index
    %c0_21 = arith.constant 0 : index
    %36 = vector.load %arg9[%c0_20, %c0_21] : memref<1x128xf32, #tpu.memory_space<vmem>>, vector<1x128xf32>
    %37 = vector.broadcast %36 : vector<1x128xf32> to vector<8x128xf32>
    %38 = arith.mulf %37, %35 : vector<8x128xf32>
    %c0_22 = arith.constant 0 : index
    %c0_23 = arith.constant 0 : index
    %39 = vector.load %arg10[%c0_22, %c0_23] : memref<1x128xf32, #tpu.memory_space<vmem>>, vector<1x128xf32>
    %40 = vector.broadcast %39 : vector<1x128xf32> to vector<8x128xf32>
    %41 = arith.addf %38, %40 : vector<8x128xf32>
    %c0_24 = arith.constant 0 : index
    %c0_25 = arith.constant 0 : index
    %42 = vector.load %arg11[%c0_24, %c0_25] : memref<8x128xf32, #tpu.memory_space<vmem>>, vector<8x128xf32>
    tpu.vector_store %arg11[%c0_24, %c0_25], %41 {strides = array<i32>} : memref<8x128xf32, #tpu.memory_space<vmem>>, vector<8x128xf32>,
    return
  }
  func.func @transform_0(%arg0: i32) -> (i32, i32) {
    %c0_i32 = arith.constant 0 : i32
    %c0_i32_0 = arith.constant 0 : i32
    return %c0_i32, %arg0 : i32, i32
  }
  func.func @transform_1(%arg0: i32) -> (i32, i32) {
    %c0_i32 = arith.constant 0 : i32
    %c0_i32_0 = arith.constant 0 : i32
    %c0_i32_1 = arith.constant 0 : i32
    return %c0_i32, %c0_i32_0 : i32, i32
  }
  func.func @transform_2(%arg0: i32) -> (i32, i32) {
    %c0_i32 = arith.constant 0 : i32
    %c0_i32_0 = arith.constant 0 : i32
    %c0_i32_1 = arith.constant 0 : i32
    return %c0_i32, %c0_i32_0 : i32, i32
  }
  func.func @transform_3(%arg0: i32) -> (i32, i32) {
    %c0_i32 = arith.constant 0 : i32
    %c0_i32_0 = arith.constant 0 : i32
    %c0_i32_1 = arith.constant 0 : i32
    return %c0_i32, %c0_i32_0 : i32, i32
  }
  func.func @transform_4(%arg0: i32) -> (i32, i32) {
    %c0_i32 = arith.constant 0 : i32
    %c0_i32_0 = arith.constant 0 : i32
    %c0_i32_1 = arith.constant 0 : i32
    return %c0_i32, %c0_i32_0 : i32, i32
  }
  func.func @transform_5(%arg0: i32) -> (i32, i32) {
    %c0_i32 = arith.constant 0 : i32
    %c0_i32_0 = arith.constant 0 : i32
    %c0_i32_1 = arith.constant 0 : i32
    return %c0_i32, %c0_i32_0 : i32, i32
  }
  func.func @transform_6(%arg0: i32) -> (i32, i32) {
    %c0_i32 = arith.constant 0 : i32
    %c0_i32_0 = arith.constant 0 : i32
    %c0_i32_1 = arith.constant 0 : i32
    return %c0_i32, %c0_i32_0 : i32, i32
  }
  func.func @transform_7(%arg0: i32) -> (i32, i32) {
    %c0_i32 = arith.constant 0 : i32
    %c0_i32_0 = arith.constant 0 : i32
    %c0_i32_1 = arith.constant 0 : i32
    return %c0_i32, %c0_i32_0 : i32, i32
  }
  func.func @transform_8(%arg0: i32) -> (i32, i32) {
    %c0_i32 = arith.constant 0 : i32
    %c0_i32_0 = arith.constant 0 : i32
    %c0_i32_1 = arith.constant 0 : i32
    return %c0_i32, %c0_i32_0 : i32, i32
  }
  func.func @transform_9(%arg0: i32) -> (i32, i32) {
    %c0_i32 = arith.constant 0 : i32
    %c0_i32_0 = arith.constant 0 : i32
    %c0_i32_1 = arith.constant 0 : i32
    return %c0_i32, %c0_i32_0 : i32, i32
  }
  func.func @transform_10(%arg0: i32) -> (i32, i32) {
    %c0_i32 = arith.constant 0 : i32
    %c0_i32_0 = arith.constant 0 : i32
    return %c0_i32, %arg0 : i32, i32
  }
}

</mosaic_0001>

<bundles_post_ra>
// kernel: neg.5
= control target key start
LH: loop header
LB: loop body
LE: loop exit
PB: predicated region body
PF: predicated region fallthrough
CT: control target
= control target key end

     0   :  { %s24_s0 = inlined_call_operand.vmem [shape: f32[8,128], index: 0, kind: input, shape index: {}]   ;;  %s25_s1 = inlined_call_operand.vmem [shape: f32[8,128], index: 1, kind: output, shape index: {}]  }
   0x1   :  { %v2_v0 = vld [vmem:[%s24_s0] sm:$0xff] }
   0x2   :  { %v5_v1 = vxor.u32 2147483648, %v2_v0 }
   0x4   :  { %7 = vst [vmem:[%s25_s1] sm:$0xff] %v5_v1 }

// kernel: tile.31
= control target key start
LH: loop header
LB: loop body
LE: loop exit
PB: predicated region body
PF: predicated region fallthrough
CT: control target
= control target key end

     0   :  { %vm42_vm0 = vcmask 1047556   ;;  %vm44_vm1 = vcmask 261120   ;;  %s93_s22 = smov 32   ;;  %s94_s25 = smov 64   ;;  %vm54_vm2 = vcmask 1048320   ;;  %vm64_vm3 = vcmask 785920   ;;  %s146_s0 = inlined_call_operand.vmem [shape: f32[8,4,32], index: 0, kind: input, shape index: {}]   ;;  %s147_s1 = inlined_call_operand.vmem [shape: f32[8,128], index: 1, kind: output, shape index: {}]  }
   0x1   :  { %v82_v0 = vld [vmem:[%s146_s0 + $0x1c] sm:$0xf]  ;;  %v83_v1 = vld [vmem:[%s146_s0 + $0x18] sm:$0xf]  ;;  %v84_v2 = vld [vmem:[%s146_s0 + $0x14] sm:$0xf] }
   0x2   :  { %8 = vst [vmem:[#allocation0 + $0x38] sm:$0xf] %v82_v0  ;;  %13 = vst [vmem:[#allocation0 + $0x30] sm:$0xf] %v83_v1  ;;  %v85_v3 = vld [vmem:[%s146_s0 + $0x10] sm:$0xf] }
   0x3   :  { %18 = vst [vmem:[#allocation0 + $0x28] sm:$0xf] %v84_v2  ;;  %v86_v4 = vld [vmem:[%s146_s0 + $0xc] sm:$0xf]  ;;  %v87_v5 = vld [vmem:[%s146_s0 + $0x8] sm:$0xf] }
   0x4   :  { %23 = vst [vmem:[#allocation0 + $0x20] sm:$0xf] %v85_v3  ;;  %28 = vst [vmem:[#allocation0 + $0x18] sm:$0xf] %v86_v4  ;;  %v88_v6 = vld [vmem:[%s146_s0 + $0x4] sm:$0xf] }
   0x5   :  { %33 = vst [vmem:[#allocation0 + $0x10] sm:$0xf] %v87_v5  ;;  %v38_v7 = vld [vmem:[%s146_s0] sm:$0xf]  ;;  %37 = vst [vmem:[#allocation0 + $0x8] sm:$0xf] %v88_v6 }
   0x6   :  { %39 = vst [vmem:[#allocation0] sm:$0xf] %v38_v7  ;;  %s92_s0 = smov 96   ;;  %vm74_vm4 = vcmask 523520  }
   0xb   :  { %v49_v8 = vld [vmem:[#allocation0 + $0x3] ss:$8 sm:$0xf0]   ;;  %v59_v9 = vld [vmem:[#allocation0 + $0x2] ss:$8 sm:$0xf0]  }
   0xc   :  { %v69_v14 = vld [vmem:[#allocation0 + $0x1] ss:$8 sm:$0xf0]   ;;  %v41_v17 = vld [vmem:[#allocation0] ss:$8 sm:$0xf0]  }
   0xd   :  { %v47_v10 = vld [vmem:[#allocation0 + $0x3] ss:$8 sm:$0xf]   ;;  %v57_v11 = vld [vmem:[#allocation0 + $0x2] ss:$8 sm:$0xf]  }
   0xe   :  { %v51_v12 = vsel %vm42_vm0, %v49_v8, %v47_v10  ;;  %v67_v13 = vld [vmem:[#allocation0 + $0x1] ss:$8 sm:$0xf]   ;;  %v40_v16 = vld [vmem:[#allocation0] ss:$8 sm:$0xf]   ;;  %v61_v18 = vsel %vm42_vm0, %v59_v9, %v57_v11 }
   0xf   :  { %52 = vrot.lane.b32.xlu0 %v51_v12, %s92_s0  ;;  %v71_v15 = vsel %vm42_vm0, %v69_v14, %v67_v13  ;;  %v43_v19 = vsel %vm42_vm0, %v41_v17, %v40_v16 }
  0x10   :  { %72 = vrot.lane.b32.xlu1 %v71_v15, %s93_s22  ;;  %45 = vst.msk [vmem:[%s147_s1] sm:$0xff] %vm44_vm1, %v43_v19  }
  0x13   :  { %62 = vrot.lane.b32.xlu0 %v61_v18, %s94_s25 }
  0x81   :  { %v53_v20 = vpop.permute.xlu0 %52  }
  0x82   :  { %55 = vst.msk [vmem:[%s147_s1] sm:$0xff] %vm54_vm2, %v53_v20   ;;  %v73_v21 = vpop.permute.xlu1 %72  }
  0x85   :  { %v63_v22 = vpop.permute.xlu0 %62  }
  0x86   :  { %65 = vst.msk [vmem:[%s147_s1] sm:$0xff] %vm64_vm3, %v63_v22  }
  0x87   :  { %75 = vst.msk [vmem:[%s147_s1] sm:$0xff] %vm74_vm4, %v73_v21  }

// kernel: _low_filter_forward.1
= control target key start
LH: loop header
LB: loop body
LE: loop exit
PB: predicated region body
PF: predicated region fallthrough
CT: control target
= control target key end

     0   :  { %v515_v0 = vmov 0.0   ;;  %vm49_vm0 = vcmask 1043456   ;;  %vm516_vm1 = vmmov 0   ;;  %vm45_vm2 = vcmask 64512   ;;  %s684_s0 = inlined_call_operand.vmem [shape: f32[8,128], index: 0, kind: input, shape index: {}]   ;;  %s685_s1 = inlined_call_operand.vmem [shape: bf16[16,8], index: 1, kind: input, shape index: {}]   ;;  %s686_s5 = inlined_call_operand.vmem [shape: bf16[128,128], index: 5, kind: input, shape index: {}]   ;;  %s687_s3 = inlined_call_operand.vmem [shape: f32[16,128], index: 3, kind: input, shape index: {}]   ;;  %s688_s4 = inlined_call_operand.vmem [shape: f32[16,128], index: 4, kind: input, shape index: {}]   ;;  %s689_s2 = inlined_call_operand.vmem [shape: bf16[8,16], index: 2, kind: input, shape index: {}]   ;;  %s690_s6 = inlined_call_operand.vmem [shape: bf16[128,128], index: 6, kind: input, shape index: {}]   ;;  %s691_s7 = inlined_call_operand.vmem [shape: f32[1,128], index: 7, kind: input, shape index: {}]   ;;  %s692_s8 = inlined_call_operand.vmem [shape: f32[1,128], index: 8, kind: input, shape index: {}]   ;;  %s693_s9 = inlined_call_operand.vmem [shape: f32[1,128], index: 9, kind: input, shape index: {}]   ;;  %s694_s10 = inlined_call_operand.vmem [shape: f32[8,128], index: 10, kind: output, shape index: {}]  }
   0x1   :  { %442 = vmatprep.subr.bf16.mxu0 %v515_v0  ;;  %v576_v1 = vld [vmem:[%s684_s0] sm:$0xff]  ;;  %444 = vmatprep.mubr.msk.bf16.mxu0 %vm516_vm1, %v515_v0  ;;  %v498_v6 = vld [vmem:[%s686_s5 + $0x8] sm:$0xff]   ;;  %v499_v7 = vld [vmem:[%s686_s5 + $0x10] sm:$0xff]   ;;  %vm106_vm3 = vcmask 130048  }
   0x2   :  { %v39_v2 = vpack.c.bf16 %v576_v1, %v576_v1  ;;  %448 = vmatprep.subr.bf16.mxu1 %v515_v0  ;;  %450 = vmatprep.mubr.msk.bf16.mxu1 %vm516_vm1, %v515_v0  ;;  %v496_v4 = vld [vmem:[%s685_s1] sm:$0xff]   ;;  %v500_v8 = vld [vmem:[%s686_s5 + $0x18] sm:$0xff]   ;;  %v502_v10 = vld [vmem:[%s686_s5 + $0x28] sm:$0xff]  }
   0x3   :  { %v497_v5 = vld [vmem:[%s686_s5] sm:$0xff]   ;;  %v503_v11 = vld [vmem:[%s686_s5 + $0x30] sm:$0xff]   ;;  %v99_v14 = vld [vmem:[%s688_s4 + $0x8] sm:$0xff] }
   0x4   :  { %v51_v3 = vsel %vm49_vm0, %v39_v2, 0  ;;  %v501_v9 = vld [vmem:[%s686_s5 + $0x20] sm:$0xff]   ;;  %v95_v15 = vld [vmem:[%s687_s3 + $0x8] sm:$0xff]  ;;  %v504_v28 = vld [vmem:[%s686_s5 + $0x38] sm:$0xff]  }
   0x5   :  { %443 = vmatpush3.bf16.msra.mxu0 %v51_v3  ;;  %v94_v12 = vld [vmem:[%s687_s3] sm:$0xff]  ;;  %v506_v30 = vld [vmem:[%s690_s6 + $0x8] sm:$0xff]   ;;  %v507_v31 = vld [vmem:[%s690_s6 + $0x10] sm:$0xff]  }
   0x6   :  { %454 = vmatprep.subr.bf16.mxu0 %v515_v0  ;;  %v98_v16 = vld [vmem:[%s688_s4] sm:$0xff]  ;;  %v508_v32 = vld [vmem:[%s690_s6 + $0x18] sm:$0xff]   ;;  %v510_v34 = vld [vmem:[%s690_s6 + $0x28] sm:$0xff]  }
   0x7   :  { %v104_v27 = vld [vmem:[%s689_s2] sm:$0xf]  ;;  %v511_v40 = vld [vmem:[%s690_s6 + $0x30] sm:$0xff]   ;;  %v512_v41 = vld [vmem:[%s690_s6 + $0x38] sm:$0xff]  }
   0x8   :  { %445 = vmatmul.mubr.msk.bf16.vlgmr.msra.gmra.mrb[0].mxu0 %vm45_vm2, %v496_v4  ;;  %v505_v29 = vld [vmem:[%s690_s6] sm:$0xff]  }
   0x9   :  { %470 = vmatprep.mubr.msk.bf16.mxu0 %vm516_vm1, %v515_v0  ;;  %455 = vmatpush3.bf16.msra.mxu0 %v497_v5  ;;  %v509_v33 = vld [vmem:[%s690_s6 + $0x20] sm:$0xff]  }
   0xa   :  { %456 = vmatprep.subr.bf16.mxu0 %v515_v0  ;;  %v401_v42 = vld [vmem:[%s691_s7] ss:$0 sm:$0xff] }
   0xb   :  { %v418_v61 = vld [vmem:[%s692_s8] ss:$0 sm:$0xff] }
   0xc   :  { %v419_v63 = vld [vmem:[%s693_s9] ss:$0 sm:$0xff] }
   0xd   :  { %457 = vmatpush3.bf16.msra.mxu0 %v498_v6 }
   0xe   :  { %458 = vmatprep.subr.bf16.mxu0 %v515_v0 }
  0x11   :  { %459 = vmatpush3.bf16.msra.mxu0 %v499_v7 }
  0x12   :  { %460 = vmatprep.subr.bf16.mxu0 %v515_v0 }
  0x15   :  { %461 = vmatpush3.bf16.msra.mxu0 %v500_v8 }
  0x16   :  { %462 = vmatprep.subr.bf16.mxu0 %v515_v0 }
  0x19   :  { %463 = vmatpush3.bf16.msra.mxu0 %v501_v9 }
  0x1a   :  { %464 = vmatprep.subr.bf16.mxu0 %v515_v0 }
  0x1d   :  { %465 = vmatpush3.bf16.msra.mxu0 %v502_v10 }
  0x1e   :  { %466 = vmatprep.subr.bf16.mxu0 %v515_v0 }
  0x21   :  { %467 = vmatpush3.bf16.msra.mxu0 %v503_v11 }
  0x22   :  { %468 = vmatprep.subr.bf16.mxu0 %v515_v0 }
  0x25   :  { %469 = vmatpush3.bf16.msra.mxu0 %v504_v28 }
  0xdb   :  { %v87_v13 = vpop.f32.mrb[0].mxu0 }
  0xdc   :  { %v446_v17 = vpop.f32.mrb[1].mxu0  ;;  %v96_v19 = vmul.f32 %v94_v12, %v87_v13  ;;  %v101_v20 = vmul.f32 %v99_v14, %v87_v13 }
  0xdd   :  { %v90_v18 = vpop.f32.mrb[2].mxu0 }
  0xde   :  { %v97_v21 = vmul.f32 %v95_v15, %v90_v18  ;;  %v100_v22 = vmul.f32 %v98_v16, %v90_v18  ;;  %v447_v23 = vpop.f32.mrb[3].mxu0 }
  0xe0   :  { %v102_v24 = vadd.f32 %v100_v22, %v96_v19  ;;  %v103_v25 = vadd.f32 %v101_v20, %v97_v21 }
  0xe2   :  { %v105_v26 = vpack.c.bf16 %v103_v25, %v102_v24 }
  0xe4   :  { %449 = vmatpush3.bf16.msra.mxu1 %v105_v26 }
  0xe5   :  { %474 = vmatprep.subr.bf16.mxu1 %v515_v0 }
  0xe7   :  { %451 = vmatmul.mubr.msk.bf16.vlgmr.msra.gmra.mrb[0].mxu1 %vm106_vm3, %v104_v27 }
  0xe8   :  { %490 = vmatprep.mubr.msk.bf16.mxu1 %vm516_vm1, %v515_v0  ;;  %475 = vmatpush3.bf16.msra.mxu1 %v505_v29 }
  0xe9   :  { %476 = vmatprep.subr.bf16.mxu1 %v515_v0 }
  0xec   :  { %477 = vmatpush3.bf16.msra.mxu1 %v506_v30 }
  0xed   :  { %478 = vmatprep.subr.bf16.mxu1 %v515_v0 }
  0xf0   :  { %479 = vmatpush3.bf16.msra.mxu1 %v507_v31 }
  0xf1   :  { %480 = vmatprep.subr.bf16.mxu1 %v515_v0 }
  0xf4   :  { %481 = vmatpush3.bf16.msra.mxu1 %v508_v32 }
  0xf5   :  { %482 = vmatprep.subr.bf16.mxu1 %v515_v0 }
  0xf8   :  { %483 = vmatpush3.bf16.msra.mxu1 %v509_v33 }
  0xf9   :  { %484 = vmatprep.subr.bf16.mxu1 %v515_v0 }
  0xfc   :  { %485 = vmatpush3.bf16.msra.mxu1 %v510_v34 }
  0xfd   :  { %486 = vmatprep.subr.bf16.mxu1 %v515_v0 }
 0x100   :  { %487 = vmatpush3.bf16.msra.mxu1 %v511_v40 }
 0x101   :  { %488 = vmatprep.subr.bf16.mxu1 %v515_v0 }
 0x104   :  { %489 = vmatpush3.bf16.msra.mxu1 %v512_v41 }
 0x1ba   :  { %v144_v35 = vpop.f32.mrb[0].mxu1 }
 0x1bb   :  { %v150_v36 = vpack.c.bf16 %v144_v35, %v144_v35  ;;  %v452_v37 = vpop.f32.mrb[1].mxu1 }
 0x1bc   :  { %v147_v38 = vpop.f32.mrb[2].mxu1 }
 0x1bd   :  { %v453_v39 = vpop.f32.mrb[3].mxu1  ;;  %471 = vmatmul.mubr.bf16.vlgmr.msra.gmra.mrb[4].mxu0 %v150_v36 }
 0x290   :  { %v256_v43 = vpop.f32.mrb[4].mxu0 }
 0x291   :  { %v257_v44 = vadd.f32 %v401_v42, %v256_v43  ;;  %v472_v45 = vpop.f32.mrb[5].mxu0 }
 0x292   :  { %v259_v46 = vpop.f32.mrb[6].mxu0 }
 0x293   :  { %v262_v47 = vadd.f32 %v257_v44, %v576_v1  ;;  %v473_v48 = vpop.f32.mrb[7].mxu0 }
 0x295   :  { %v263_v49 = vmul.f32 %v262_v47, %v262_v47 }
 0x297   :  { %v264_v50 = vpack.c.bf16 %v263_v49, %v262_v47 }
 0x299   :  { %491 = vmatmul.mubr.bf16.vlgmr.msra.gmra.mrb[4].mxu1 %v264_v50 }
 0x36c   :  { %v363_v51 = vpop.f32.mrb[4].mxu1 }
 0x36d   :  { %v370_v52 = vmul.f32 %v363_v51, %v363_v51  ;;  %v492_v53 = vpop.f32.mrb[5].mxu1  ;;  %v373_v59 = vsub.f32 %v262_v47, %v363_v51 }
 0x36e   :  { %v366_v54 = vpop.f32.mrb[6].mxu1 }
 0x36f   :  { %v371_v55 = vsub.f32 %v366_v54, %v370_v52  ;;  %v493_v56 = vpop.f32.mrb[7].mxu1 }
 0x371   :  { %v372_v57 = vmax.f32 %v371_v55, 0.0 }
 0x373   :  { %v374_v58 = vadd.f32 1e-12, %v372_v57 }
 0x375   :  { %513 = vrsqrt.f32 %v374_v58 }
 0x37f   :  { %v514_v60 = vpop.eup %513 }
 0x380   :  { %v376_v62 = vmul.f32 %v514_v60, %v373_v59 }
 0x382   :  { %v384_v0 = vmul.f32 %v418_v61, %v376_v62 }
 0x384   :  { %v392_v1 = vadd.f32 %v419_v63, %v384_v0 }
 0x386   :  { %393 = vst [vmem:[%s694_s10] sm:$0xff] %v392_v1 }

</bundles_post_ra>
